<compile_context>
chip_gen: v7x
topology: tpu7x:2x2x1
jax: 0.10.0
libtpu: 0.0.40
codegen_flags: <defaults>
</compile_context>

<pallas_src>
import jax
import jax.numpy as jnp
from jax.experimental import pallas as pl
from jax.experimental.pallas import tpu as pltpu

D_IN, D_H, D_OUT = 512, 256, 512


def _round_up(x, m):
    return ((x + m - 1) // m) * m


def _cast(a, dt):
    dt = jnp.dtype(dt)
    return a if a.dtype == dt else a.astype(dt)


def ronghe_kernel(x_ref, w1_ref, b1_ref, w2_ref, b2_ref, w3_ref, b3_ref, o_ref):
    # Cast x in-kernel (saves a separate wrapper-side HBM pass over x).
    x = x_ref[...].astype(w1_ref.dtype)
    # fc1 + ReLU  (bf16 x bf16 -> f32 accumulate on the MXU; bias/ReLU in f32)
    h = jnp.dot(x, w1_ref[...], preferred_element_type=jnp.float32)
    h = jnp.maximum(h + b1_ref[...], 0.0)
    # fc2 + ReLU
    h = jnp.dot(h.astype(w2_ref.dtype), w2_ref[...],
                preferred_element_type=jnp.float32)
    h = jnp.maximum(h + b2_ref[...], 0.0)
    # fc3 + ReLU
    h = jnp.dot(h.astype(w3_ref.dtype), w3_ref[...],
                preferred_element_type=jnp.float32)
    h = jnp.maximum(h + b3_ref[...], 0.0)
    o_ref[...] = h.astype(o_ref.dtype)


def ronghe_forward(x, params, *, tb=512, compute_dtype=jnp.bfloat16,
                   out_dtype=jnp.bfloat16, min_parallel_rows=256):
    """x: (B, 512).  params: dict w1,b1,w2,b2,w3,b3; weights stored (in, out)."""
    B, D = x.shape
    assert D == D_IN

    # bf16 packs 16 rows per vreg sublane group; use 16-row granularity when it
    # can actually be filled, else fall back to the 8-row f32 granularity.
    row_align = 16 if (jnp.dtype(compute_dtype) == jnp.bfloat16 and B >= 16) else 8
    tb = max(int(tb), row_align)

    # Balanced tiling: (a) cap the tile at tb, (b) force >=2 (and an even
    # number of) grid steps once there is enough work so both v7x TensorCores
    # get batch tiles, (c) round each tile to the packing granularity,
    # (d) minimize padded rows (no wrapper-side jnp.pad: the cdiv grid's
    # partial last block covers any remainder).
    n_tiles = int(pl.cdiv(B, tb))
    n_tiles = max(n_tiles, min(2, int(pl.cdiv(B, min_parallel_rows))))
    if n_tiles > 1 and (n_tiles % 2):
        n_tiles += 1
    tb_eff = _round_up(int(pl.cdiv(B, n_tiles)), row_align)
    n_tiles = int(pl.cdiv(B, tb_eff))

    cd = compute_dtype
    w1 = _cast(params["w1"], cd)
    w2 = _cast(params["w2"], cd)
    w3 = _cast(params["w3"], cd)
    b1 = _cast(params["b1"], jnp.float32)
    b2 = _cast(params["b2"], jnp.float32)
    b3 = _cast(params["b3"], jnp.float32)

    def resident(shape):
        # Grid-invariant blocks (weights / biases): constant index_map, so they
        # are DMA'd once and stay resident in VMEM across all batch tiles.
        return pl.BlockSpec(shape, lambda i: (0, 0))

    flops = 2 * B * (D_IN * D_H + D_H * D_H + D_H * D_OUT)
    param_bytes = sum(int(a.size) * a.dtype.itemsize
                      for a in (w1, b1, w2, b2, w3, b3))
    bytes_accessed = (B * D_IN * x.dtype.itemsize
                      + B * D_OUT * jnp.dtype(out_dtype).itemsize
                      + param_bytes)

    out = pl.pallas_call(
        ronghe_kernel,
        out_shape=jax.ShapeDtypeStruct((B, D_OUT), out_dtype),
        grid_spec=pltpu.PrefetchScalarGridSpec(
            num_scalar_prefetch=0,
            grid=(n_tiles,),
            in_specs=[
                pl.BlockSpec((tb_eff, D_IN), lambda i: (i, 0)),   # x tile
                resident((D_IN, D_H)),                            # w1
                resident((1, D_H)),                               # b1
                resident((D_H, D_H)),                             # w2
                resident((1, D_H)),                               # b2
                resident((D_H, D_OUT)),                           # w3
                resident((1, D_OUT)),                             # b3
            ],
            out_specs=pl.BlockSpec((tb_eff, D_OUT), lambda i: (i, 0)),
        ),
        compiler_params=pltpu.CompilerParams(
            dimension_semantics=("parallel",),   # batch tiles shard across TCs
        ),
        cost_estimate=pl.CostEstimate(
            flops=flops, transcendentals=0, bytes_accessed=bytes_accessed),
    )(x, w1, b1, w2, b2, w3, b3)
    return out


def init_params(key):
    """PyTorch nn.Linear-style init U[-1/sqrt(in), 1/sqrt(in)]; weights stored (in, out)."""
    ks = jax.random.split(key, 6)

    def linear(kw, kb, fan_in, fan_out):
        bound = 1.0 / jnp.sqrt(float(fan_in))
        w = jax.random.uniform(kw, (fan_in, fan_out), jnp.float32, -bound, bound)
        b = jax.random.uniform(kb, (1, fan_out), jnp.float32, -bound, bound)
        return w, b

    w1, b1 = linear(ks[0], ks[1], D_IN, D_H)
    w2, b2 = linear(ks[2], ks[3], D_H, D_H)
    w3, b3 = linear(ks[4], ks[5], D_H, D_OUT)
    return {"w1": w1, "b1": b1, "w2": w2, "b2": b2, "w3": w3, "b3": b3}


def prepare_params(params, compute_dtype=jnp.bfloat16):
    """One-time cast: weights -> compute_dtype (MXU feed), biases -> f32 (epilogue)."""
    return {k: (v.astype(compute_dtype) if k.startswith("w")
                else v.astype(jnp.float32))
            for k, v in params.items()}


def ronghe_ref(x, params, compute_dtype=jnp.float32):
    """Reference mirroring the kernel's dtype path (f32 accumulate, bias/ReLU in f32)."""
    cd = compute_dtype
    h = jnp.dot(x.astype(cd), params["w1"].astype(cd),
                preferred_element_type=jnp.float32)
    h = jnp.maximum(h + params["b1"], 0.0)
    h = jnp.dot(h.astype(cd), params["w2"].astype(cd),
                preferred_element_type=jnp.float32)
    h = jnp.maximum(h + params["b2"], 0.0)
    h = jnp.dot(h.astype(cd), params["w3"].astype(cd),
                preferred_element_type=jnp.float32)
    h = jnp.maximum(h + params["b3"], 0.0)
    return h


if __name__ == "__main__":
    key = jax.random.PRNGKey(0)
    k_x, k_p = jax.random.split(key)
    params_f32 = init_params(k_p)
    params = prepare_params(params_f32)   # cast weights once, outside the forward

    # B=8: single small tile.  B=384: two balanced full tiles of 192 rows
    # (no padded rows, even grid for v7x's two TensorCores).
    for B in (8, 384):
        x = jax.random.normal(jax.random.fold_in(k_x, B), (B, D_IN), jnp.float32)

        out = jax.block_until_ready(ronghe_forward(x, params))
        assert out.shape == (B, D_OUT)
        assert out.dtype == jnp.bfloat16
        out_f32 = out.astype(jnp.float32)

        # Exact-path check against a bf16-matched reference (only the final
        # bf16 output rounding differs).
        ref_bf16 = ronghe_ref(x, params_f32, jnp.bfloat16)
        assert jnp.allclose(out_f32, ref_bf16, atol=2e-2, rtol=2e-2)

        # Semantics check against the full-f32 PyTorch-equivalent reference
        # (looser tolerance: kernel matmuls + output run in bf16).
        ref_f32 = ronghe_ref(x, params_f32, jnp.float32)
        assert jnp.allclose(out_f32, ref_f32, atol=1e-1, rtol=1e-1)

        # ReLU semantics: non-negative outputs.
        assert bool(jnp.all(out_f32 >= 0.0))

    print("KERNEL_OK")
</pallas_src>

<mosaic_0001>
module attributes {stable_mosaic.version = 11 : i64} {
  func.func @ronghe_kernel(%arg0: i32, %arg1: memref<8x512xf32, #tpu.memory_space<vmem>>, %arg2: memref<512x256xbf16, #tpu.memory_space<vmem>>, %arg3: memref<1x256xf32, #tpu.memory_space<vmem>>, %arg4: memref<256x256xbf16, #tpu.memory_space<vmem>>, %arg5: memref<1x256xf32, #tpu.memory_space<vmem>>, %arg6: memref<256x512xbf16, #tpu.memory_space<vmem>>, %arg7: memref<1x512xf32, #tpu.memory_space<vmem>>, %arg8: memref<8x512xbf16, #tpu.memory_space<vmem>>) attributes {dimension_semantics = [#tpu.dimension_semantics<parallel>], iteration_bounds = array<i64: 1>, scalar_prefetch = 0 : i64, scratch_operands = 0 : i64, tpu.core_type = #tpu.core_type<tc>, window_params = [{transform_indices = @transform_0, window_bounds = array<i64: 8, 512>}, {pipeline_mode = #tpu.pipeline_mode<synchronous>, transform_indices = @transform_1, window_bounds = array<i64: 512, 256>}, {pipeline_mode = #tpu.pipeline_mode<synchronous>, transform_indices = @transform_2, window_bounds = array<i64: 1, 256>}, {pipeline_mode = #tpu.pipeline_mode<synchronous>, transform_indices = @transform_3, window_bounds = array<i64: 256, 256>}, {pipeline_mode = #tpu.pipeline_mode<synchronous>, transform_indices = @transform_4, window_bounds = array<i64: 1, 256>}, {pipeline_mode = #tpu.pipeline_mode<synchronous>, transform_indices = @transform_5, window_bounds = array<i64: 256, 512>}, {pipeline_mode = #tpu.pipeline_mode<synchronous>, transform_indices = @transform_6, window_bounds = array<i64: 1, 512>}, {transform_indices = @transform_7, window_bounds = array<i64: 8, 512>}]} {
    %c0 = arith.constant 0 : index
    %c0_0 = arith.constant 0 : index
    %0 = vector.load %arg1[%c0, %c0_0] : memref<8x512xf32, #tpu.memory_space<vmem>>, vector<8x512xf32>
    %1 = arith.truncf %0 : vector<8x512xf32> to vector<8x512xbf16>
    %c0_1 = arith.constant 0 : index
    %c0_2 = arith.constant 0 : index
    %2 = vector.load %arg2[%c0_1, %c0_2] : memref<512x256xbf16, #tpu.memory_space<vmem>>, vector<512x256xbf16>
    %cst = arith.constant dense<0.000000e+00> : vector<8x256xf32>
    %3 = tpu.matmul %1, %2, %cst {dimension_numbers = #tpu.dot_dimension_numbers<[1], [0], [0], [1], [0, 0, 1, 1], [], []>} : vector<8x512xbf16>, vector<512x256xbf16>, vector<8x256xf32> -> vector<8x256xf32>
    %c0_3 = arith.constant 0 : index
    %c0_4 = arith.constant 0 : index
    %4 = vector.load %arg3[%c0_3, %c0_4] : memref<1x256xf32, #tpu.memory_space<vmem>>, vector<1x256xf32>
    %5 = vector.broadcast %4 : vector<1x256xf32> to vector<8x256xf32>
    %6 = arith.addf %3, %5 : vector<8x256xf32>
    %cst_5 = arith.constant 0.000000e+00 : f32
    %7 = vector.broadcast %cst_5 : f32 to vector<8x256xf32>
    %8 = arith.maximumf %6, %7 : vector<8x256xf32>
    %9 = arith.truncf %8 : vector<8x256xf32> to vector<8x256xbf16>
    %c0_6 = arith.constant 0 : index
    %c0_7 = arith.constant 0 : index
    %10 = vector.load %arg4[%c0_6, %c0_7] : memref<256x256xbf16, #tpu.memory_space<vmem>>, vector<256x256xbf16>
    %cst_8 = arith.constant dense<0.000000e+00> : vector<8x256xf32>
    %11 = tpu.matmul %9, %10, %cst_8 {dimension_numbers = #tpu.dot_dimension_numbers<[1], [0], [0], [1], [0, 0, 1, 1], [], []>} : vector<8x256xbf16>, vector<256x256xbf16>, vector<8x256xf32> -> vector<8x256xf32>
    %c0_9 = arith.constant 0 : index
    %c0_10 = arith.constant 0 : index
    %12 = vector.load %arg5[%c0_9, %c0_10] : memref<1x256xf32, #tpu.memory_space<vmem>>, vector<1x256xf32>
    %13 = vector.broadcast %12 : vector<1x256xf32> to vector<8x256xf32>
    %14 = arith.addf %11, %13 : vector<8x256xf32>
    %cst_11 = arith.constant 0.000000e+00 : f32
    %15 = vector.broadcast %cst_11 : f32 to vector<8x256xf32>
    %16 = arith.maximumf %14, %15 : vector<8x256xf32>
    %17 = arith.truncf %16 : vector<8x256xf32> to vector<8x256xbf16>
    %c0_12 = arith.constant 0 : index
    %c0_13 = arith.constant 0 : index
    %18 = vector.load %arg6[%c0_12, %c0_13] : memref<256x512xbf16, #tpu.memory_space<vmem>>, vector<256x512xbf16>
    %cst_14 = arith.constant dense<0.000000e+00> : vector<8x512xf32>
    %19 = tpu.matmul %17, %18, %cst_14 {dimension_numbers = #tpu.dot_dimension_numbers<[1], [0], [0], [1], [0, 0, 1, 1], [], []>} : vector<8x256xbf16>, vector<256x512xbf16>, vector<8x512xf32> -> vector<8x512xf32>
    %c0_15 = arith.constant 0 : index
    %c0_16 = arith.constant 0 : index
    %20 = vector.load %arg7[%c0_15, %c0_16] : memref<1x512xf32, #tpu.memory_space<vmem>>, vector<1x512xf32>
    %21 = vector.broadcast %20 : vector<1x512xf32> to vector<8x512xf32>
    %22 = arith.addf %19, %21 : vector<8x512xf32>
    %cst_17 = arith.constant 0.000000e+00 : f32
    %23 = vector.broadcast %cst_17 : f32 to vector<8x512xf32>
    %24 = arith.maximumf %22, %23 : vector<8x512xf32>
    %25 = arith.truncf %24 : vector<8x512xf32> to vector<8x512xbf16>
    %c0_18 = arith.constant 0 : index
    %c0_19 = arith.constant 0 : index
    %26 = vector.load %arg8[%c0_18, %c0_19] : memref<8x512xbf16, #tpu.memory_space<vmem>>, vector<8x512xbf16>
    tpu.vector_store %arg8[%c0_18, %c0_19], %25 {strides = array<i32>} : memref<8x512xbf16, #tpu.memory_space<vmem>>, vector<8x512xbf16>,
    return
  }
  func.func @transform_0(%arg0: i32) -> (i32, i32) {
    %c0_i32 = arith.constant 0 : i32
    %c0_i32_0 = arith.constant 0 : i32
    return %arg0, %c0_i32 : i32, i32
  }
  func.func @transform_1(%arg0: i32) -> (i32, i32) {
    %c0_i32 = arith.constant 0 : i32
    %c0_i32_0 = arith.constant 0 : i32
    %c0_i32_1 = arith.constant 0 : i32
    return %c0_i32, %c0_i32_0 : i32, i32
  }
  func.func @transform_2(%arg0: i32) -> (i32, i32) {
    %c0_i32 = arith.constant 0 : i32
    %c0_i32_0 = arith.constant 0 : i32
    %c0_i32_1 = arith.constant 0 : i32
    return %c0_i32, %c0_i32_0 : i32, i32
  }
  func.func @transform_3(%arg0: i32) -> (i32, i32) {
    %c0_i32 = arith.constant 0 : i32
    %c0_i32_0 = arith.constant 0 : i32
    %c0_i32_1 = arith.constant 0 : i32
    return %c0_i32, %c0_i32_0 : i32, i32
  }
  func.func @transform_4(%arg0: i32) -> (i32, i32) {
    %c0_i32 = arith.constant 0 : i32
    %c0_i32_0 = arith.constant 0 : i32
    %c0_i32_1 = arith.constant 0 : i32
    return %c0_i32, %c0_i32_0 : i32, i32
  }
  func.func @transform_5(%arg0: i32) -> (i32, i32) {
    %c0_i32 = arith.constant 0 : i32
    %c0_i32_0 = arith.constant 0 : i32
    %c0_i32_1 = arith.constant 0 : i32
    return %c0_i32, %c0_i32_0 : i32, i32
  }
  func.func @transform_6(%arg0: i32) -> (i32, i32) {
    %c0_i32 = arith.constant 0 : i32
    %c0_i32_0 = arith.constant 0 : i32
    %c0_i32_1 = arith.constant 0 : i32
    return %c0_i32, %c0_i32_0 : i32, i32
  }
  func.func @transform_7(%arg0: i32) -> (i32, i32) {
    %c0_i32 = arith.constant 0 : i32
    %c0_i32_0 = arith.constant 0 : i32
    return %arg0, %c0_i32 : i32, i32
  }
}

</mosaic_0001>

<bundles_post_ra>
// kernel: tpu_custom_call.1
= control target key start
LH: loop header
LB: loop body
LE: loop exit
PB: predicated region body
PF: predicated region fallthrough
CT: control target
= control target key end

     0   :  { %12 = vsyncpa [#allocation3], 0  ;;  %s2023_s0 = inlined_call_operand.hbm [shape: f32[8,512], index: 0, kind: input, shape index: {}]   ;;  %s2024_s1 = inlined_call_operand.hbm [shape: bf16[512,256], index: 1, kind: input, shape index: {}]   ;;  %s2025_s2 = inlined_call_operand.vmem [shape: f32[1,256], index: 2, kind: input, shape index: {}]   ;;  %s2026_s3 = inlined_call_operand.hbm [shape: bf16[256,256], index: 3, kind: input, shape index: {}]   ;;  %s2027_s4 = inlined_call_operand.vmem [shape: f32[1,256], index: 4, kind: input, shape index: {}]   ;;  %s2028_s5 = inlined_call_operand.hbm [shape: bf16[256,512], index: 5, kind: input, shape index: {}]   ;;  %s2029_s6 = inlined_call_operand.vmem [shape: f32[1,512], index: 6, kind: input, shape index: {}]   ;;  %s2030_s7 = inlined_call_operand.hbm [shape: bf16[8,512], index: 7, kind: output, shape index: {}]  }
   0x1   :  { %13 = vsyncpa [#allocation6], 0 }
   0x2   :  { %14 = vsyncpa [#allocation9], 0 }
   0x3   :  { %15 = vsyncpa [#allocation4], 0  ;;  %s1883_s24 = smov [#allocation5]   ;;  %s1765_s28 = scalar_lea.hbm %s2024_s1, 8192 }
   0x4   :  { %s31_s25 = sshll.u32 %s1883_s24, 4  ;;  %p1766_p0 = scmp.ne.s32.totalorder %s2024_s1, %s1765_s28  ;;  %s32_s25 = int_to_ptr.vmem [resolvable:$true] %s31_s25 }
   0x5   :  { %p1769_p1 = scmp.lt.u32.totalorder %s1765_s28, %s2024_s1 }
   0x7   :  { %p1771_p2 = pnand %p1769_p1, %p1766_p0 }
   0x9   :  { %1774 = shalt.err (!%p1771_p2)
}
   0xa   :  { %s1775_s10 = scalar_lea.vmem %s32_s25, 8192  ;;  %p1780_p4 = scmp.lt.s32.totalorder %s32_s25, %s32_s25 }
   0xb   :  { %p1776_p3 = scmp.ne.s32.totalorder %s32_s25, %s1775_s10  ;;  %p1781_p5 = scmp.lt.s32.totalorder %s1775_s10, %s1775_s10 }
   0xd   :  { %p1782_p6 = por %p1781_p5, %p1780_p4 }
   0xf   :  { %p1783_p7 = pnand %p1782_p6, %p1776_p3 }
  0x11   :  { %1786 = shalt.err (!%p1783_p7)
}
  0x12   :  { %s1884_s11 = smov 128   ;;  %s1885_s12 = smov 8  }
  0x13   :  { %37 = dma.hbm_to_vmem [thread:$0]  %s2024_s1, 8192, %s32_s25, [#allocation6], %s1884_s11, %s1884_s11, %s1885_s12  }
  0x14   :  { %s1886_s15 = smov [#allocation2]   ;;  %s1887_s17 = smov [#allocation7]  }
  0x15   :  { %s22_s16 = sshll.u32 %s1886_s15, 4  ;;  %s45_s18 = sshll.u32 %s1887_s17, 4  ;;  %s23_s16 = int_to_ptr.vmem [resolvable:$true] %s22_s16  ;;  %s46_s18 = int_to_ptr.vmem [resolvable:$true] %s45_s18 }
  0x16   :  { %s1787_s21 = scalar_lea.hbm %s2023_s0, 512 }
  0x17   :  { %p1788_p8 = scmp.ne.s32.totalorder %s2023_s0, %s1787_s21  ;;  %p1791_p9 = scmp.lt.u32.totalorder %s1787_s21, %s2023_s0 }
  0x19   :  { %p1793_p10 = pnand %p1791_p9, %p1788_p8 }
  0x1b   :  { %1796 = shalt.err (!%p1793_p10)
}
  0x1c   :  { %s1797_s1 = scalar_lea.vmem %s23_s16, 512  ;;  %p1802_p12 = scmp.lt.s32.totalorder %s23_s16, %s23_s16 }
  0x1d   :  { %p1798_p11 = scmp.ne.s32.totalorder %s23_s16, %s1797_s1  ;;  %p1803_p13 = scmp.lt.s32.totalorder %s1797_s1, %s1797_s1 }
  0x1f   :  { %p1804_p0 = por %p1803_p13, %p1802_p12 }
  0x21   :  { %p1805_p1 = pnand %p1804_p0, %p1798_p11 }
  0x23   :  { %1808 = shalt.err (!%p1805_p1)
}
  0x24   :  { %25 = dma.hbm_to_vmem [thread:$0]  %s2023_s0, 512, %s23_s16, [#allocation3]  }
  0x25   :  { %s1809_s30 = scalar_lea.hbm %s2026_s3, 4096 }
  0x26   :  { %p1810_p2 = scmp.ne.s32.totalorder %s2026_s3, %s1809_s30  ;;  %p1813_p3 = scmp.lt.u32.totalorder %s1809_s30, %s2026_s3 }
  0x28   :  { %p1815_p4 = pnand %p1813_p3, %p1810_p2 }
  0x2a   :  { %1818 = shalt.err (!%p1815_p4)
}
  0x2b   :  { %s1819_s14 = scalar_lea.vmem %s46_s18, 4096  ;;  %p1824_p6 = scmp.lt.s32.totalorder %s46_s18, %s46_s18 }
  0x2c   :  { %p1820_p5 = scmp.ne.s32.totalorder %s46_s18, %s1819_s14  ;;  %p1825_p7 = scmp.lt.s32.totalorder %s1819_s14, %s1819_s14 }
  0x2e   :  { %p1826_p8 = por %p1825_p7, %p1824_p6 }
  0x30   :  { %p1827_p9 = pnand %p1826_p8, %p1820_p5 }
  0x32   :  { %1830 = shalt.err (!%p1827_p9)
}
  0x33   :  { %51 = dma.hbm_to_vmem [thread:$0]  %s2026_s3, 4096, %s46_s18, [#allocation6], %s1884_s11, %s1884_s11, %s1885_s12  }
  0x34   :  { %s1888_s16 = smov [#allocation8]   ;;  %s1831_s21 = scalar_lea.hbm %s2028_s5, 8192 }
  0x35   :  { %s59_s17 = sshll.u32 %s1888_s16, 4  ;;  %p1832_p10 = scmp.ne.s32.totalorder %s2028_s5, %s1831_s21  ;;  %s60_s17 = int_to_ptr.vmem [resolvable:$true] %s59_s17 }
  0x36   :  { %p1835_p11 = scmp.lt.u32.totalorder %s1831_s21, %s2028_s5 }
  0x38   :  { %p1837_p12 = pnand %p1835_p11, %p1832_p10 }
  0x3a   :  { %1840 = shalt.err (!%p1837_p12)
}
  0x3b   :  { %s1841_s1 = scalar_lea.vmem %s60_s17, 8192  ;;  %p1846_p0 = scmp.lt.s32.totalorder %s60_s17, %s60_s17 }
  0x3c   :  { %p1842_p13 = scmp.ne.s32.totalorder %s60_s17, %s1841_s1  ;;  %p1847_p1 = scmp.lt.s32.totalorder %s1841_s1, %s1841_s1 }
  0x3e   :  { %p1848_p2 = por %p1847_p1, %p1846_p0 }
  0x40   :  { %p1849_p3 = pnand %p1848_p2, %p1842_p13 }
  0x42   :  { %1852 = shalt.err (!%p1849_p3)
}
  0x43   :  { %s1889_s3 = smov 256   ;;  %s1890_s11 = smov 16  }
  0x44   :  { %65 = dma.hbm_to_vmem [thread:$0]  %s2028_s5, 8192, %s60_s17, [#allocation9], %s1889_s3, %s1889_s3, %s1890_s11  }
  0x45   :  { %1875 = dma.done.wait [#allocation3], 512  }
  0x46   :  { %1876 = vsyncadd [#allocation3], 4294966784 }
  0x47   :  { %1877 = dma.done.wait [#allocation6], 12288  }
  0x48   :  { %1878 = vsyncadd [#allocation6], 4294955008 }
  0x49   :  { %1879 = dma.done.wait [#allocation9], 8192  }
  0x4a   :  { %1880 = vsyncadd [#allocation9], 4294959104  ;;  %v1525_v0 = vld [vmem:[#allocation5 + $0x4] ss:$8 sps:$4 sm:$0xff]   ;;  %v1527_v1 = vld [vmem:[#allocation5] ss:$8 sps:$4 sm:$0xff]  }
  0x4b   :  { %484 = vmatprep.subr.bf16.mxu0 %v1525_v0  ;;  %v1528_v2 = vld [vmem:[#allocation5 + $0x14] ss:$8 sps:$4 sm:$0xff]   ;;  %v1530_v3 = vld [vmem:[#allocation5 + $0x10] ss:$8 sps:$4 sm:$0xff]   ;;  %v1531_v4 = vld [vmem:[#allocation5 + $0x24] ss:$8 sps:$4 sm:$0xff]  }
  0x4c   :  { %485 = vmatpush1.bf16.msra.mxu0 %v1527_v1  ;;  %v1533_v5 = vld [vmem:[#allocation5 + $0x20] ss:$8 sps:$4 sm:$0xff]   ;;  %v1534_v6 = vld [vmem:[#allocation5 + $0x34] ss:$8 sps:$4 sm:$0xff]   ;;  %v1536_v7 = vld [vmem:[#allocation5 + $0x30] ss:$8 sps:$4 sm:$0xff]  }
  0x4d   :  { %486 = vmatprep.subr.bf16.mxu0 %v1528_v2  ;;  %v1537_v8 = vld [vmem:[#allocation5 + $0x44] ss:$8 sps:$4 sm:$0xff]   ;;  %v1539_v9 = vld [vmem:[#allocation5 + $0x40] ss:$8 sps:$4 sm:$0xff]   ;;  %v1540_v10 = vld [vmem:[#allocation5 + $0x54] ss:$8 sps:$4 sm:$0xff]  }
  0x4e   :  { %v1542_v11 = vld [vmem:[#allocation5 + $0x50] ss:$8 sps:$4 sm:$0xff]   ;;  %v1543_v12 = vld [vmem:[#allocation5 + $0x64] ss:$8 sps:$4 sm:$0xff]   ;;  %v1545_v15 = vld [vmem:[#allocation5 + $0x60] ss:$8 sps:$4 sm:$0xff]  }
  0x4f   :  { %v81_v13 = vld [vmem:[#allocation2 + $0x8] sm:$0xff]  ;;  %v1546_v16 = vld [vmem:[#allocation5 + $0x74] ss:$8 sps:$4 sm:$0xff]   ;;  %v1548_v17 = vld [vmem:[#allocation5 + $0x70] ss:$8 sps:$4 sm:$0xff]  }
  0x50   :  { %487 = vmatpush1.bf16.msra.mxu0 %v1530_v3  ;;  %v85_v14 = vpack.c.bf16 %v81_v13, %v81_v13  ;;  %v1549_v18 = vld [vmem:[#allocation5 + $0x84] ss:$8 sps:$4 sm:$0xff]   ;;  %v1551_v19 = vld [vmem:[#allocation5 + $0x80] ss:$8 sps:$4 sm:$0xff]   ;;  %v1552_v20 = vld [vmem:[#allocation5 + $0x94] ss:$8 sps:$4 sm:$0xff]  }
  0x51   :  { %488 = vmatprep.subr.bf16.mxu0 %v1531_v4  ;;  %v1554_v21 = vld [vmem:[#allocation5 + $0x90] ss:$8 sps:$4 sm:$0xff]   ;;  %v1555_v22 = vld [vmem:[#allocation5 + $0xa4] ss:$8 sps:$4 sm:$0xff]   ;;  %v1557_v23 = vld [vmem:[#allocation5 + $0xa0] ss:$8 sps:$4 sm:$0xff]  }
  0x52   :  { %516 = vmatprep.mubr.bf16.mxu0 %v85_v14  ;;  %v1558_v24 = vld [vmem:[#allocation5 + $0xb4] ss:$8 sps:$4 sm:$0xff]   ;;  %v1560_v25 = vld [vmem:[#allocation5 + $0xb0] ss:$8 sps:$4 sm:$0xff]   ;;  %v1561_v26 = vld [vmem:[#allocation5 + $0xc4] ss:$8 sps:$4 sm:$0xff]  }
  0x53   :  { %v1621_v27 = vld [vmem:[#allocation7 + $0x4] ss:$8 sps:$4 sm:$0xff]   ;;  %v1623_v28 = vld [vmem:[#allocation7] ss:$8 sps:$4 sm:$0xff]   ;;  %v1624_v30 = vld [vmem:[#allocation7 + $0x14] ss:$8 sps:$4 sm:$0xff]  }
  0x54   :  { %489 = vmatpush1.bf16.msra.mxu0 %v1533_v5  ;;  %v1563_v29 = vld [vmem:[#allocation5 + $0xc0] ss:$8 sps:$4 sm:$0xff]   ;;  %774 = vmatprep.subr.bf16.mxu1 %v1621_v27  ;;  %v1564_v31 = vld [vmem:[#allocation5 + $0xd4] ss:$8 sps:$4 sm:$0xff]   ;;  %v1626_v32 = vld [vmem:[#allocation7 + $0x10] ss:$8 sps:$4 sm:$0xff]  }
  0x55   :  { %490 = vmatprep.subr.bf16.mxu0 %v1534_v6  ;;  %775 = vmatpush1.bf16.msra.mxu1 %v1623_v28  ;;  %v1627_v33 = vld [vmem:[#allocation7 + $0x24] ss:$8 sps:$4 sm:$0xff]   ;;  %v1566_v34 = vld [vmem:[#allocation5 + $0xd0] ss:$8 sps:$4 sm:$0xff]   ;;  %v1629_v36 = vld [vmem:[#allocation7 + $0x20] ss:$8 sps:$4 sm:$0xff]  }
  0x56   :  { %776 = vmatprep.subr.bf16.mxu1 %v1624_v30  ;;  %v1567_v35 = vld [vmem:[#allocation5 + $0xe4] ss:$8 sps:$4 sm:$0xff]   ;;  %v1630_v37 = vld [vmem:[#allocation7 + $0x34] ss:$8 sps:$4 sm:$0xff]   ;;  %v1569_v38 = vld [vmem:[#allocation5 + $0xe0] ss:$8 sps:$4 sm:$0xff]  }
  0x57   :  { %v1570_v39 = vld [vmem:[#allocation5 + $0xf4] ss:$8 sps:$4 sm:$0xff]   ;;  %v1632_v40 = vld [vmem:[#allocation7 + $0x30] ss:$8 sps:$4 sm:$0xff]   ;;  %v1633_v41 = vld [vmem:[#allocation7 + $0x44] ss:$8 sps:$4 sm:$0xff]  }
  0x58   :  { %491 = vmatpush1.bf16.msra.mxu0 %v1536_v7  ;;  %v1572_v42 = vld [vmem:[#allocation5 + $0xf0] ss:$8 sps:$4 sm:$0xff]   ;;  %v1575_v43 = vld [vmem:[#allocation5 + $0x104] ss:$8 sps:$4 sm:$0xff]   ;;  %v1635_v46 = vld [vmem:[#allocation7 + $0x40] ss:$8 sps:$4 sm:$0xff]  }
  0x59   :  { %492 = vmatprep.subr.bf16.mxu0 %v1537_v8  ;;  %777 = vmatpush1.bf16.msra.mxu1 %v1626_v32  ;;  %v80_v44 = vld [vmem:[#allocation2] sm:$0xff]  ;;  %v83_v45 = vld [vmem:[#allocation2 + $0x18] sm:$0xff] }
  0x5a   :  { %778 = vmatprep.subr.bf16.mxu1 %v1627_v33  ;;  %v1636_v47 = vld [vmem:[#allocation7 + $0x54] ss:$8 sps:$4 sm:$0xff]   ;;  %v1573_v48 = vld [vmem:[#allocation5 + $0x100] ss:$8 sps:$4 sm:$0xff]   ;;  %v84_v49 = vpack.c.bf16 %v80_v44, %v80_v44  ;;  %v1638_v51 = vld [vmem:[#allocation7 + $0x50] ss:$8 sps:$4 sm:$0xff]   ;;  %v87_v52 = vpack.c.bf16 %v83_v45, %v83_v45 }
  0x5b   :  { %v1578_v50 = vld [vmem:[#allocation5 + $0x114] ss:$8 sps:$4 sm:$0xff]   ;;  %v1639_v53 = vld [vmem:[#allocation7 + $0x64] ss:$8 sps:$4 sm:$0xff]   ;;  %v1576_v54 = vld [vmem:[#allocation5 + $0x110] ss:$8 sps:$4 sm:$0xff]  }
  0x5c   :  { %493 = vmatpush1.bf16.msra.mxu0 %v1539_v9  ;;  %v1581_v55 = vld [vmem:[#allocation5 + $0x124] ss:$8 sps:$4 sm:$0xff]   ;;  %v1641_v56 = vld [vmem:[#allocation7 + $0x60] ss:$8 sps:$4 sm:$0xff]   ;;  %v1642_v57 = vld [vmem:[#allocation7 + $0x74] ss:$8 sps:$4 sm:$0xff]  }
  0x5d   :  { %494 = vmatprep.subr.bf16.mxu0 %v1540_v10  ;;  %779 = vmatpush1.bf16.msra.mxu1 %v1629_v36  ;;  %v1579_v58 = vld [vmem:[#allocation5 + $0x120] ss:$8 sps:$4 sm:$0xff]   ;;  %v1584_v59 = vld [vmem:[#allocation5 + $0x134] ss:$8 sps:$4 sm:$0xff]   ;;  %v1644_v60 = vld [vmem:[#allocation7 + $0x70] ss:$8 sps:$4 sm:$0xff]  }
  0x5e   :  { %780 = vmatprep.subr.bf16.mxu1 %v1630_v37  ;;  %v1645_v61 = vld [vmem:[#allocation7 + $0x84] ss:$8 sps:$4 sm:$0xff]   ;;  %v1582_v62 = vld [vmem:[#allocation5 + $0x130] ss:$8 sps:$4 sm:$0xff]   ;;  %v1647_v0 = vld [vmem:[#allocation7 + $0x80] ss:$8 sps:$4 sm:$0xff]  }
  0x5f   :  { %v1587_v63 = vld [vmem:[#allocation5 + $0x144] ss:$8 sps:$4 sm:$0xff]   ;;  %v1648_v1 = vld [vmem:[#allocation7 + $0x94] ss:$8 sps:$4 sm:$0xff]   ;;  %v1585_v2 = vld [vmem:[#allocation5 + $0x140] ss:$8 sps:$4 sm:$0xff]  }
  0x60   :  { %495 = vmatpush1.bf16.msra.mxu0 %v1542_v11  ;;  %v1590_v3 = vld [vmem:[#allocation5 + $0x154] ss:$8 sps:$4 sm:$0xff]   ;;  %v1650_v4 = vld [vmem:[#allocation7 + $0x90] ss:$8 sps:$4 sm:$0xff]   ;;  %v1651_v5 = vld [vmem:[#allocation7 + $0xa4] ss:$8 sps:$4 sm:$0xff]  }
  0x61   :  { %496 = vmatprep.subr.bf16.mxu0 %v1543_v12  ;;  %781 = vmatpush1.bf16.msra.mxu1 %v1632_v40  ;;  %v1588_v6 = vld [vmem:[#allocation5 + $0x150] ss:$8 sps:$4 sm:$0xff]   ;;  %v1593_v7 = vld [vmem:[#allocation5 + $0x164] ss:$8 sps:$4 sm:$0xff]   ;;  %v1653_v8 = vld [vmem:[#allocation7 + $0xa0] ss:$8 sps:$4 sm:$0xff]  }
  0x62   :  { %782 = vmatprep.subr.bf16.mxu1 %v1633_v41  ;;  %v1654_v9 = vld [vmem:[#allocation7 + $0xb4] ss:$8 sps:$4 sm:$0xff]   ;;  %v1591_v10 = vld [vmem:[#allocation5 + $0x160] ss:$8 sps:$4 sm:$0xff]   ;;  %v1656_v12 = vld [vmem:[#allocation7 + $0xb0] ss:$8 sps:$4 sm:$0xff]  }
  0x63   :  { %v1596_v11 = vld [vmem:[#allocation5 + $0x174] ss:$8 sps:$4 sm:$0xff]   ;;  %v1657_v13 = vld [vmem:[#allocation7 + $0xc4] ss:$8 sps:$4 sm:$0xff]   ;;  %v1594_v14 = vld [vmem:[#allocation5 + $0x170] ss:$8 sps:$4 sm:$0xff]  }
  0x64   :  { %497 = vmatpush1.bf16.msra.mxu0 %v1545_v15  ;;  %v1599_v15 = vld [vmem:[#allocation5 + $0x184] ss:$8 sps:$4 sm:$0xff]   ;;  %v1609_v27 = vld [vmem:[#allocation5 + $0x1c0] ss:$8 sps:$4 sm:$0xff]   ;;  %v1614_v28 = vld [vmem:[#allocation5 + $0x1d4] ss:$8 sps:$4 sm:$0xff]  }
  0x65   :  { %498 = vmatprep.subr.bf16.mxu0 %v1546_v16  ;;  %783 = vmatpush1.bf16.msra.mxu1 %v1635_v46  ;;  %v1659_v16 = vld [vmem:[#allocation7 + $0xc0] ss:$8 sps:$4 sm:$0xff]   ;;  %v1617_v30 = vld [vmem:[#allocation5 + $0x1e4] ss:$8 sps:$4 sm:$0xff]   ;;  %v1620_v32 = vld [vmem:[#allocation5 + $0x1f4] ss:$8 sps:$4 sm:$0xff]  }
  0x66   :  { %784 = vmatprep.subr.bf16.mxu1 %v1636_v47  ;;  %v1618_v33 = vld [vmem:[#allocation5 + $0x1f0] ss:$8 sps:$4 sm:$0xff]   ;;  %v1663_v36 = vld [vmem:[#allocation7 + $0xe4] ss:$8 sps:$4 sm:$0xff]   ;;  %v1665_v37 = vld [vmem:[#allocation7 + $0xe0] ss:$8 sps:$4 sm:$0xff]  }
  0x67   :  { %v1671_v40 = vld [vmem:[#allocation8 + $0x4] ss:$16 sps:$4 sm:$0xff]   ;;  %v1672_v41 = vld [vmem:[#allocation8 + $0x8] ss:$16 sps:$4 sm:$0xff]   ;;  %v1686_v45 = vld [vmem:[#allocation8 + $0x4c] ss:$16 sps:$4 sm:$0xff]  }
  0x68   :  { %499 = vmatpush1.bf16.msra.mxu0 %v1548_v17  ;;  %v1660_v17 = vld [vmem:[#allocation7 + $0xd4] ss:$8 sps:$4 sm:$0xff]   ;;  %v1678_v44 = vld [vmem:[#allocation8 + $0x28] ss:$16 sps:$4 sm:$0xff]  }
  0x69   :  { %500 = vmatprep.subr.bf16.mxu0 %v1549_v18  ;;  %785 = vmatpush1.bf16.msra.mxu1 %v1638_v51  ;;  %v1597_v18 = vld [vmem:[#allocation5 + $0x180] ss:$8 sps:$4 sm:$0xff]   ;;  %v1692_v47 = vld [vmem:[#allocation8 + $0x6c] ss:$16 sps:$4 sm:$0xff]  }
  0x6a   :  { %786 = vmatprep.subr.bf16.mxu1 %v1639_v53  ;;  %v1684_v46 = vld [vmem:[#allocation8 + $0x48] ss:$16 sps:$4 sm:$0xff]   ;;  %v1704_v51 = vld [vmem:[#allocation8 + $0xac] ss:$16 sps:$4 sm:$0xff]  }
  0x6b   :  { %v1710_v53 = vld [vmem:[#allocation8 + $0xcc] ss:$16 sps:$4 sm:$0xff]  }
  0x6c   :  { %501 = vmatpush1.bf16.msra.mxu0 %v1551_v19  ;;  %v1602_v19 = vld [vmem:[#allocation5 + $0x194] ss:$8 sps:$4 sm:$0xff]  }
  0x6d   :  { %502 = vmatprep.subr.bf16.mxu0 %v1552_v20  ;;  %787 = vmatpush1.bf16.msra.mxu1 %v1641_v56  ;;  %v1662_v20 = vld [vmem:[#allocation7 + $0xd0] ss:$8 sps:$4 sm:$0xff]  }
  0x6e   :  { %788 = vmatprep.subr.bf16.mxu1 %v1642_v57  ;;  %v1714_v56 = vld [vmem:[#allocation8 + $0xe8] ss:$16 sps:$4 sm:$0xff]   ;;  %v1722_v57 = vld [vmem:[#allocation8 + $0x10c] ss:$16 sps:$4 sm:$0xff]  }
  0x70   :  { %503 = vmatpush1.bf16.msra.mxu0 %v1554_v21  ;;  %v1600_v21 = vld [vmem:[#allocation5 + $0x190] ss:$8 sps:$4 sm:$0xff]  }
  0x71   :  { %504 = vmatprep.subr.bf16.mxu0 %v1555_v22  ;;  %789 = vmatpush1.bf16.msra.mxu1 %v1644_v60  ;;  %v1605_v22 = vld [vmem:[#allocation5 + $0x1a4] ss:$8 sps:$4 sm:$0xff]   ;;  %v1726_v60 = vld [vmem:[#allocation8 + $0x128] ss:$16 sps:$4 sm:$0xff]  }
  0x72   :  { %790 = vmatprep.subr.bf16.mxu1 %v1645_v61  ;;  %v1734_v61 = vld [vmem:[#allocation8 + $0x14c] ss:$16 sps:$4 sm:$0xff]  }
  0x74   :  { %505 = vmatpush1.bf16.msra.mxu0 %v1557_v23  ;;  %v1603_v23 = vld [vmem:[#allocation5 + $0x1a0] ss:$8 sps:$4 sm:$0xff]  }
  0x75   :  { %506 = vmatprep.subr.bf16.mxu0 %v1558_v24  ;;  %791 = vmatpush1.bf16.msra.mxu1 %v1647_v0  ;;  %v1608_v24 = vld [vmem:[#allocation5 + $0x1b4] ss:$8 sps:$4 sm:$0xff]   ;;  %v1738_v0 = vld [vmem:[#allocation8 + $0x168] ss:$16 sps:$4 sm:$0xff]  }
  0x76   :  { %792 = vmatprep.subr.bf16.mxu1 %v1648_v1  ;;  %v1746_v1 = vld [vmem:[#allocation8 + $0x18c] ss:$16 sps:$4 sm:$0xff]  }
  0x78   :  { %507 = vmatpush1.bf16.msra.mxu0 %v1560_v25  ;;  %v1606_v25 = vld [vmem:[#allocation5 + $0x1b0] ss:$8 sps:$4 sm:$0xff]  }
  0x79   :  { %508 = vmatprep.subr.bf16.mxu0 %v1561_v26  ;;  %793 = vmatpush1.bf16.msra.mxu1 %v1650_v4  ;;  %v1611_v26 = vld [vmem:[#allocation5 + $0x1c4] ss:$8 sps:$4 sm:$0xff]   ;;  %v1750_v4 = vld [vmem:[#allocation8 + $0x1a8] ss:$16 sps:$4 sm:$0xff]  }
  0x7a   :  { %794 = vmatprep.subr.bf16.mxu1 %v1651_v5  ;;  %v154_v5 = vlaneseq }
  0x7c   :  { %509 = vmatpush1.bf16.msra.mxu0 %v1563_v29  ;;  %v1612_v29 = vld [vmem:[#allocation5 + $0x1d0] ss:$8 sps:$4 sm:$0xff]  }
  0x7d   :  { %510 = vmatprep.subr.bf16.mxu0 %v1564_v31  ;;  %795 = vmatpush1.bf16.msra.mxu1 %v1653_v8  ;;  %v1615_v31 = vld [vmem:[#allocation5 + $0x1e0] ss:$8 sps:$4 sm:$0xff]  }
  0x7e   :  { %796 = vmatprep.subr.bf16.mxu1 %v1654_v9  ;;  %v152_v8 = vld [vmem:[%s2025_s2] sm:$0x3] }
  0x80   :  { %511 = vmatpush1.bf16.msra.mxu0 %v1566_v34  ;;  %v82_v34 = vld [vmem:[#allocation2 + $0x10] sm:$0xff] }
  0x81   :  { %512 = vmatprep.subr.bf16.mxu0 %v1567_v35  ;;  %797 = vmatpush1.bf16.msra.mxu1 %v1656_v12  ;;  %v86_v35 = vpack.c.bf16 %v82_v34, %v82_v34  ;;  %v1705_v34 = vld [vmem:[#allocation8 + $0xc0] ss:$16 sps:$4 sm:$0xff]  }
  0x82   :  { %798 = vmatprep.subr.bf16.mxu1 %v1657_v13 }
  0x84   :  { %513 = vmatpush1.bf16.msra.mxu0 %v1569_v38  ;;  %v1666_v38 = vld [vmem:[#allocation7 + $0xf4] ss:$8 sps:$4 sm:$0xff]  }
  0x85   :  { %514 = vmatprep.subr.bf16.mxu0 %v1570_v39  ;;  %799 = vmatpush1.bf16.msra.mxu1 %v1659_v16  ;;  %v1668_v39 = vld [vmem:[#allocation7 + $0xf0] ss:$8 sps:$4 sm:$0xff]  }
  0x86   :  { %800 = vmatprep.subr.bf16.mxu1 %v1660_v17 }
  0x88   :  { %515 = vmatpush1.bf16.msra.mxu0 %v1572_v42  ;;  %v1674_v42 = vld [vmem:[#allocation8 + $0xc] ss:$16 sps:$4 sm:$0xff]  }
  0x89   :  { %525 = vmatprep.subr.bf16.mxu0 %v1575_v43  ;;  %801 = vmatpush1.bf16.msra.mxu1 %v1662_v20  ;;  %v1680_v43 = vld [vmem:[#allocation8 + $0x2c] ss:$16 sps:$4 sm:$0xff]  }
  0x8a   :  { %802 = vmatprep.subr.bf16.mxu1 %v1663_v36  ;;  %v1711_v36 = vld [vmem:[#allocation8 + $0xe0] ss:$16 sps:$4 sm:$0xff]  }
  0x8b   :  { %517 = vmatmul.mubr.bf16.vlgmr.msra.gmra.mrb[0].mxu0 %v84_v49  ;;  %v1698_v49 = vld [vmem:[#allocation8 + $0x8c] ss:$16 sps:$4 sm:$0xff]  }
  0x8c   :  { %526 = vmatpush1.bf16.msra.mxu0 %v1573_v48  ;;  %557 = vmatprep.mubr.bf16.mxu0 %v87_v52  ;;  %v1690_v48 = vld [vmem:[#allocation8 + $0x68] ss:$16 sps:$4 sm:$0xff]  }
  0x8d   :  { %527 = vmatprep.subr.bf16.mxu0 %v1578_v50  ;;  %803 = vmatpush1.bf16.msra.mxu1 %v1665_v37  ;;  %v1696_v50 = vld [vmem:[#allocation8 + $0x88] ss:$16 sps:$4 sm:$0xff]   ;;  %v1719_v37 = vld [vmem:[#allocation8 + $0x104] ss:$16 sps:$4 sm:$0xff]  }
  0x8e   :  { %804 = vmatprep.subr.bf16.mxu1 %v1666_v38  ;;  %v1702_v52 = vld [vmem:[#allocation8 + $0xa8] ss:$16 sps:$4 sm:$0xff]   ;;  %v1717_v38 = vld [vmem:[#allocation8 + $0x100] ss:$16 sps:$4 sm:$0xff]  }
  0x90   :  { %528 = vmatpush1.bf16.msra.mxu0 %v1576_v54  ;;  %v1708_v54 = vld [vmem:[#allocation8 + $0xc8] ss:$16 sps:$4 sm:$0xff]  }
  0x91   :  { %529 = vmatprep.subr.bf16.mxu0 %v1581_v55  ;;  %805 = vmatpush1.bf16.msra.mxu1 %v1668_v39  ;;  %v1716_v55 = vld [vmem:[#allocation8 + $0xec] ss:$16 sps:$4 sm:$0xff]   ;;  %v1725_v39 = vld [vmem:[#allocation8 + $0x124] ss:$16 sps:$4 sm:$0xff]  }
  0x92   :  { %1225 = vmatprep.subr.bf16.mxu1 %v1671_v40  ;;  %v1723_v40 = vld [vmem:[#allocation8 + $0x120] ss:$16 sps:$4 sm:$0xff]  }
  0x94   :  { %530 = vmatpush1.bf16.msra.mxu0 %v1579_v58  ;;  %v1720_v58 = vld [vmem:[#allocation8 + $0x108] ss:$16 sps:$4 sm:$0xff]  }
  0x95   :  { %531 = vmatprep.subr.bf16.mxu0 %v1584_v59  ;;  %v1728_v59 = vld [vmem:[#allocation8 + $0x12c] ss:$16 sps:$4 sm:$0xff]  }
  0x98   :  { %532 = vmatpush1.bf16.msra.mxu0 %v1582_v62  ;;  %v1732_v62 = vld [vmem:[#allocation8 + $0x148] ss:$16 sps:$4 sm:$0xff]  }
  0x99   :  { %533 = vmatprep.subr.bf16.mxu0 %v1587_v63  ;;  %v1740_v63 = vld [vmem:[#allocation8 + $0x16c] ss:$16 sps:$4 sm:$0xff]  }
  0x9c   :  { %534 = vmatpush1.bf16.msra.mxu0 %v1585_v2  ;;  %v1744_v2 = vld [vmem:[#allocation8 + $0x188] ss:$16 sps:$4 sm:$0xff]  }
  0x9d   :  { %535 = vmatprep.subr.bf16.mxu0 %v1590_v3  ;;  %v1752_v3 = vld [vmem:[#allocation8 + $0x1ac] ss:$16 sps:$4 sm:$0xff]  }
  0xa0   :  { %536 = vmatpush1.bf16.msra.mxu0 %v1588_v6  ;;  %v1986_v6 = vshrl.u32 %v154_v5, 7 }
  0xa1   :  { %537 = vmatprep.subr.bf16.mxu0 %v1593_v7 }
  0xa2   :  { %v1989_v7 = vsub.s32 0, %v1986_v6  ;;  %v1995_v9 = vsub.s32 1, %v1986_v6 }
  0xa4   :  { %538 = vmatpush1.bf16.msra.mxu0 %v1591_v10  ;;  %v157_v10 = vrot.slane %v152_v8, %v1989_v7 }
  0xa5   :  { %539 = vmatprep.subr.bf16.mxu0 %v1596_v11  ;;  %v161_v11 = vrot.slane %v152_v8, %v1995_v9  ;;  %v895_v8 = vsub.s32 2, %v1986_v6 }
  0xa8   :  { %540 = vmatpush1.bf16.msra.mxu0 %v1594_v14 }
  0xa9   :  { %541 = vmatprep.subr.bf16.mxu0 %v1599_v15 }
  0xac   :  { %542 = vmatpush1.bf16.msra.mxu0 %v1597_v18 }
  0xad   :  { %543 = vmatprep.subr.bf16.mxu0 %v1602_v19 }
  0xb0   :  { %544 = vmatpush1.bf16.msra.mxu0 %v1600_v21  ;;  %v1669_v21 = vld [vmem:[#allocation8] ss:$16 sps:$4 sm:$0xff]  }
  0xb1   :  { %545 = vmatprep.subr.bf16.mxu0 %v1605_v22 }
  0xb4   :  { %546 = vmatpush1.bf16.msra.mxu0 %v1603_v23  ;;  %v1677_v23 = vld [vmem:[#allocation8 + $0x24] ss:$16 sps:$4 sm:$0xff]  }
  0xb5   :  { %547 = vmatprep.subr.bf16.mxu0 %v1608_v24  ;;  %v1675_v24 = vld [vmem:[#allocation8 + $0x20] ss:$16 sps:$4 sm:$0xff]  }
  0xb8   :  { %548 = vmatpush1.bf16.msra.mxu0 %v1606_v25  ;;  %v1683_v25 = vld [vmem:[#allocation8 + $0x44] ss:$16 sps:$4 sm:$0xff]  }
  0xb9   :  { %549 = vmatprep.subr.bf16.mxu0 %v1611_v26  ;;  %v1681_v26 = vld [vmem:[#allocation8 + $0x40] ss:$16 sps:$4 sm:$0xff]  }
  0xbc   :  { %550 = vmatpush1.bf16.msra.mxu0 %v1609_v27  ;;  %v1689_v27 = vld [vmem:[#allocation8 + $0x64] ss:$16 sps:$4 sm:$0xff]  }
  0xbd   :  { %551 = vmatprep.subr.bf16.mxu0 %v1614_v28  ;;  %v1687_v28 = vld [vmem:[#allocation8 + $0x60] ss:$16 sps:$4 sm:$0xff]  }
  0xc0   :  { %552 = vmatpush1.bf16.msra.mxu0 %v1612_v29  ;;  %v1695_v29 = vld [vmem:[#allocation8 + $0x84] ss:$16 sps:$4 sm:$0xff]  }
  0xc1   :  { %553 = vmatprep.subr.bf16.mxu0 %v1617_v30  ;;  %v1693_v30 = vld [vmem:[#allocation8 + $0x80] ss:$16 sps:$4 sm:$0xff]  }
  0xc4   :  { %554 = vmatpush1.bf16.msra.mxu0 %v1615_v31  ;;  %v1701_v31 = vld [vmem:[#allocation8 + $0xa4] ss:$16 sps:$4 sm:$0xff]  }
  0xc5   :  { %555 = vmatprep.subr.bf16.mxu0 %v1620_v32  ;;  %v1699_v32 = vld [vmem:[#allocation8 + $0xa0] ss:$16 sps:$4 sm:$0xff]  }
  0xc8   :  { %556 = vmatpush1.bf16.msra.mxu0 %v1618_v33  ;;  %v1707_v33 = vld [vmem:[#allocation8 + $0xc4] ss:$16 sps:$4 sm:$0xff]  }
  0xc9   :  { %1266 = vmatprep.subr.bf16.mxu0 %v1674_v42  ;;  %v1729_v42 = vld [vmem:[#allocation8 + $0x140] ss:$16 sps:$4 sm:$0xff]  }
  0xcb   :  { %558 = vmatmul.mubr.bf16.vlgmr.msra.gmra.mrb[0].mxu0 %v86_v35  ;;  %v1713_v35 = vld [vmem:[#allocation8 + $0xe4] ss:$16 sps:$4 sm:$0xff]  }
  0xcc   :  { %1267 = vmatpush1.bf16.msra.mxu0 %v1672_v41  ;;  %v1731_v41 = vld [vmem:[#allocation8 + $0x144] ss:$16 sps:$4 sm:$0xff]  }
  0xcd   :  { %1268 = vmatprep.subr.bf16.mxu0 %v1680_v43  ;;  %v1737_v43 = vld [vmem:[#allocation8 + $0x164] ss:$16 sps:$4 sm:$0xff]  }
  0xd0   :  { %1269 = vmatpush1.bf16.msra.mxu0 %v1678_v44  ;;  %v1735_v44 = vld [vmem:[#allocation8 + $0x160] ss:$16 sps:$4 sm:$0xff]  }
  0xd1   :  { %1270 = vmatprep.subr.bf16.mxu0 %v1686_v45  ;;  %v1743_v45 = vld [vmem:[#allocation8 + $0x184] ss:$16 sps:$4 sm:$0xff]  }
  0xd4   :  { %1271 = vmatpush1.bf16.msra.mxu0 %v1684_v46  ;;  %v1741_v46 = vld [vmem:[#allocation8 + $0x180] ss:$16 sps:$4 sm:$0xff]  }
  0xd5   :  { %1272 = vmatprep.subr.bf16.mxu0 %v1692_v47  ;;  %v1749_v47 = vld [vmem:[#allocation8 + $0x1a4] ss:$16 sps:$4 sm:$0xff]  }
  0xd8   :  { %1273 = vmatpush1.bf16.msra.mxu0 %v1690_v48  ;;  %v1747_v48 = vld [vmem:[#allocation8 + $0x1a0] ss:$16 sps:$4 sm:$0xff]  }
  0xd9   :  { %1274 = vmatprep.subr.bf16.mxu0 %v1698_v49  ;;  %v1755_v49 = vld [vmem:[#allocation8 + $0x1c4] ss:$16 sps:$4 sm:$0xff]  }
  0xdc   :  { %1275 = vmatpush1.bf16.msra.mxu0 %v1696_v50  ;;  %v1758_v50 = vld [vmem:[#allocation8 + $0x1cc] ss:$16 sps:$4 sm:$0xff]  }
  0xdd   :  { %1276 = vmatprep.subr.bf16.mxu0 %v1704_v51  ;;  %v1753_v51 = vld [vmem:[#allocation8 + $0x1c0] ss:$16 sps:$4 sm:$0xff]  }
  0xe0   :  { %1277 = vmatpush1.bf16.msra.mxu0 %v1702_v52  ;;  %v1756_v52 = vld [vmem:[#allocation8 + $0x1c8] ss:$16 sps:$4 sm:$0xff]  }
  0xe1   :  { %1278 = vmatprep.subr.bf16.mxu0 %v1710_v53  ;;  %v1761_v53 = vld [vmem:[#allocation8 + $0x1e4] ss:$16 sps:$4 sm:$0xff]  }
  0xe4   :  { %1279 = vmatpush1.bf16.msra.mxu0 %v1708_v54  ;;  %v1764_v54 = vld [vmem:[#allocation8 + $0x1ec] ss:$16 sps:$4 sm:$0xff]  }
  0xe5   :  { %1280 = vmatprep.subr.bf16.mxu0 %v1716_v55  ;;  %v1759_v55 = vld [vmem:[#allocation8 + $0x1e0] ss:$16 sps:$4 sm:$0xff]  }
  0xe8   :  { %1281 = vmatpush1.bf16.msra.mxu0 %v1714_v56  ;;  %v1762_v56 = vld [vmem:[#allocation8 + $0x1e8] ss:$16 sps:$4 sm:$0xff]  }
  0xe9   :  { %1282 = vmatprep.subr.bf16.mxu0 %v1722_v57  ;;  %v602_v57 = vld [vmem:[%s2027_s4] sm:$0x3] }
  0xec   :  { %1283 = vmatpush1.bf16.msra.mxu0 %v1720_v58  ;;  %v607_v58 = vrot.slane %v602_v57, %v1989_v7 }
  0xed   :  { %1284 = vmatprep.subr.bf16.mxu0 %v1728_v59  ;;  %v611_v59 = vrot.slane %v602_v57, %v1995_v9 }
  0xf0   :  { %1285 = vmatpush1.bf16.msra.mxu0 %v1726_v60 }
  0xf1   :  { %1286 = vmatprep.subr.bf16.mxu0 %v1734_v61 }
  0xf4   :  { %1287 = vmatpush1.bf16.msra.mxu0 %v1732_v62 }
  0xf5   :  { %1288 = vmatprep.subr.bf16.mxu0 %v1740_v63 }
  0xf8   :  { %1289 = vmatpush1.bf16.msra.mxu0 %v1738_v0 }
  0xf9   :  { %1290 = vmatprep.subr.bf16.mxu0 %v1746_v1 }
  0xfc   :  { %1291 = vmatpush1.bf16.msra.mxu0 %v1744_v2 }
  0xfd   :  { %1292 = vmatprep.subr.bf16.mxu0 %v1752_v3 }
 0x100   :  { %1293 = vmatpush1.bf16.msra.mxu0 %v1750_v4 }
 0x101   :  { %1294 = vmatprep.subr.bf16.mxu0 %v1758_v50 }
 0x104   :  { %1295 = vmatpush1.bf16.msra.mxu0 %v1756_v52 }
 0x105   :  { %1296 = vmatprep.subr.bf16.mxu0 %v1764_v54 }
 0x108   :  { %1297 = vmatpush1.bf16.msra.mxu0 %v1762_v56 }
 0x19e   :  { %v559_v12 = vpop.f32.mrb[0].mxu0 }
 0x19f   :  { %v1510_v13 = vadd.f32 %v559_v12, %v157_v10  ;;  %v561_v14 = vpop.f32.mrb[1].mxu0  ;;  %v883_v10 = vld [vmem:[%s2029_s6] sm:$0xf]  ;;  %s1891_s6 = smov [#allocation10]  }
 0x1a0   :  { %v1511_v15 = vadd.f32 %v561_v14, %v161_v11  ;;  %v563_v16 = vpop.f32.mrb[2].mxu0  ;;  %v899_v11 = vsub.s32 3, %v1986_v6  ;;  %v888_v12 = vrot.slane %v883_v10, %v1989_v7  ;;  %v892_v14 = vrot.slane %v883_v10, %v1995_v9  ;;  %s1335_s29 = sshll.u32 %s1891_s6, 4  ;;  %s1336_s29 = int_to_ptr.vmem [resolvable:$true] %s1335_s29 }
 0x1a1   :  { %v566_v17 = vmax.f32 %v1510_v13, 0.0  ;;  %v564_v18 = vpop.f32.mrb[3].mxu0  ;;  %v896_v13 = vrot.slane %v883_v10, %v895_v8  ;;  %s1853_s30 = scalar_lea.vmem %s1336_s29, 256  ;;  %p1858_p5 = scmp.lt.s32.totalorder %s1336_s29, %s1336_s29 }
 0x1a2   :  { %v567_v19 = vmax.f32 %v1511_v15, 0.0  ;;  %v900_v15 = vrot.slane %v883_v10, %v899_v11  ;;  %p1854_p4 = scmp.ne.s32.totalorder %s1336_s29, %s1853_s30  ;;  %p1859_p6 = scmp.lt.s32.totalorder %s1853_s30, %s1853_s30 }
 0x1a3   :  { %v568_v22 = vpack.c.bf16 %v566_v17, %v566_v17 }
 0x1a4   :  { %v569_v20 = vpack.c.bf16 %v567_v19, %v567_v19  ;;  %p1860_p7 = por %p1859_p6, %p1858_p5 }
 0x1a6   :  { %806 = vmatprep.mubr.bf16.mxu1 %v569_v20  ;;  %p1861_p8 = pnand %p1860_p7, %p1854_p4 }
 0x1a7   :  { %807 = vmatmul.mubr.bf16.vlgmr.msra.gmra.mrb[0].mxu1 %v568_v22 }
 0x1a8   :  { %1226 = vmatpush1.bf16.msra.mxu1 %v1669_v21 }
 0x1a9   :  { %1227 = vmatprep.subr.bf16.mxu1 %v1677_v23 }
 0x1ac   :  { %1228 = vmatpush1.bf16.msra.mxu1 %v1675_v24 }
 0x1ad   :  { %1229 = vmatprep.subr.bf16.mxu1 %v1683_v25 }
 0x1b0   :  { %1230 = vmatpush1.bf16.msra.mxu1 %v1681_v26 }
 0x1b1   :  { %1231 = vmatprep.subr.bf16.mxu1 %v1689_v27 }
 0x1b4   :  { %1232 = vmatpush1.bf16.msra.mxu1 %v1687_v28 }
 0x1b5   :  { %1233 = vmatprep.subr.bf16.mxu1 %v1695_v29 }
 0x1b8   :  { %1234 = vmatpush1.bf16.msra.mxu1 %v1693_v30 }
 0x1b9   :  { %1235 = vmatprep.subr.bf16.mxu1 %v1701_v31 }
 0x1bc   :  { %1236 = vmatpush1.bf16.msra.mxu1 %v1699_v32 }
 0x1bd   :  { %1237 = vmatprep.subr.bf16.mxu1 %v1707_v33 }
 0x1c0   :  { %1238 = vmatpush1.bf16.msra.mxu1 %v1705_v34 }
 0x1c1   :  { %1239 = vmatprep.subr.bf16.mxu1 %v1713_v35 }
 0x1c4   :  { %1240 = vmatpush1.bf16.msra.mxu1 %v1711_v36 }
 0x1c5   :  { %1241 = vmatprep.subr.bf16.mxu1 %v1719_v37 }
 0x1c8   :  { %1242 = vmatpush1.bf16.msra.mxu1 %v1717_v38 }
 0x1c9   :  { %1243 = vmatprep.subr.bf16.mxu1 %v1725_v39 }
 0x1cc   :  { %1244 = vmatpush1.bf16.msra.mxu1 %v1723_v40 }
 0x1cd   :  { %1245 = vmatprep.subr.bf16.mxu1 %v1731_v41 }
 0x1d0   :  { %1246 = vmatpush1.bf16.msra.mxu1 %v1729_v42 }
 0x1d1   :  { %1247 = vmatprep.subr.bf16.mxu1 %v1737_v43 }
 0x1d4   :  { %1248 = vmatpush1.bf16.msra.mxu1 %v1735_v44 }
 0x1d5   :  { %1249 = vmatprep.subr.bf16.mxu1 %v1743_v45 }
 0x1d8   :  { %1250 = vmatpush1.bf16.msra.mxu1 %v1741_v46 }
 0x1d9   :  { %1251 = vmatprep.subr.bf16.mxu1 %v1749_v47 }
 0x1dc   :  { %1252 = vmatpush1.bf16.msra.mxu1 %v1747_v48 }
 0x1dd   :  { %1253 = vmatprep.subr.bf16.mxu1 %v1755_v49 }
 0x1e0   :  { %1254 = vmatpush1.bf16.msra.mxu1 %v1753_v51 }
 0x1e1   :  { %1255 = vmatprep.subr.bf16.mxu1 %v1761_v53 }
 0x1e4   :  { %1256 = vmatpush1.bf16.msra.mxu1 %v1759_v55 }
 0x27a   :  { %v808_v60 = vpop.f32.mrb[0].mxu1 }
 0x27b   :  { %v809_v61 = vadd.f32 %v808_v60, %v607_v58  ;;  %v810_v62 = vpop.f32.mrb[1].mxu1 }
 0x27c   :  { %v811_v63 = vadd.f32 %v810_v62, %v611_v59  ;;  %v812_v0 = vpop.f32.mrb[2].mxu1 }
 0x27d   :  { %v815_v1 = vmax.f32 %v809_v61, 0.0  ;;  %v813_v2 = vpop.f32.mrb[3].mxu1 }
 0x27e   :  { %v816_v3 = vmax.f32 %v811_v63, 0.0 }
 0x27f   :  { %v817_v5 = vpack.c.bf16 %v815_v1, %v815_v1 }
 0x280   :  { %v818_v4 = vpack.c.bf16 %v816_v3, %v816_v3 }
 0x282   :  { %1257 = vmatprep.mubr.bf16.mxu1 %v818_v4  ;;  %1298 = vmatprep.mubr.bf16.mxu0 %v818_v4 }
 0x283   :  { %1258 = vmatmul.mubr.bf16.vlgmr.msra.gmra.mrb[4].mxu1 %v817_v5  ;;  %1299 = vmatmul.mubr.bf16.vlgmr.msra.gmra.mrb[4].mxu0 %v817_v5 }
 0x356   :  { %v1259_v16 = vpop.f32.mrb[4].mxu1  ;;  %v1300_v17 = vpop.f32.mrb[4].mxu0 }
 0x357   :  { %v1260_v18 = vadd.f32 %v1259_v16, %v888_v12  ;;  %v1301_v19 = vadd.f32 %v1300_v17, %v896_v13  ;;  %v1261_v20 = vpop.f32.mrb[5].mxu1  ;;  %v1302_v21 = vpop.f32.mrb[5].mxu0 }
 0x358   :  { %v1262_v22 = vadd.f32 %v1261_v20, %v892_v14  ;;  %v1303_v23 = vadd.f32 %v1302_v21, %v900_v15  ;;  %v1263_v24 = vpop.f32.mrb[6].mxu1  ;;  %v1304_v25 = vpop.f32.mrb[6].mxu0 }
 0x359   :  { %v1307_v26 = vmax.f32 %v1260_v18, 0.0  ;;  %v1309_v27 = vmax.f32 %v1301_v19, 0.0  ;;  %v1264_v28 = vpop.f32.mrb[7].mxu1  ;;  %v1305_v6 = vpop.f32.mrb[7].mxu0 }
 0x35a   :  { %v1308_v7 = vmax.f32 %v1262_v22, 0.0  ;;  %v1310_v29 = vmax.f32 %v1303_v23, 0.0 }
 0x35c   :  { %v1508_v9 = vpack.c.bf16 %v1308_v7, %v1307_v26  ;;  %v1509_v30 = vpack.c.bf16 %v1310_v29, %v1309_v27 }
 0x35e   :  { %1327 = vst [vmem:[#allocation10] sm:$0xff] %v1508_v9  ;;  %1328 = vst [vmem:[#allocation10 + $0x8] sm:$0xff] %v1509_v30 }
 0x35f   :  { %1864 = shalt.err (!%p1861_p8)
}
 0x360   :  { %s1865_s10 = scalar_lea.hbm %s2030_s7, 256 }
 0x361   :  { %p1866_p9 = scmp.ne.s32.totalorder %s2030_s7, %s1865_s10  ;;  %p1869_p10 = scmp.lt.u32.totalorder %s1865_s10, %s2030_s7 }
 0x363   :  { %p1871_p11 = pnand %p1869_p10, %p1866_p9 }
 0x365   :  { %1874 = shalt.err (!%p1871_p11)
}
 0x366   :  { %1338 = dma.vmem_to_hbm [thread:$0]  %s1336_s29, 256, %s2030_s7, [#allocation4]  }
 0x367   :  { %1881 = dma.done.wait [#allocation4], 256  }
 0x368   :  { %1882 = vsyncadd [#allocation4], 4294967040 }
 0x369   :  { %1342 = vsyncpa [#allocation3], 1 }
 0x36a   :  { %1343 = vsyncpa [#allocation6], 1 }
 0x36b   :  { %1344 = vsyncpa [#allocation9], 1 }
 0x36c   :  { %1345 = vsyncpa [#allocation4], 1 }

</bundles_post_ra>
